<compile_context>
chip_gen: v6e
topology: v6e:2x2x1
jax: 0.10.0
libtpu: 0.0.40
codegen_flags: <defaults>
</compile_context>

<pallas_src>
import functools

import jax
import jax.numpy as jnp
from jax.experimental import pallas as pl
from jax.experimental.pallas import tpu as pltpu

LANE = 128          # vreg lane width (last dim)
SUBLANE_BF16 = 16   # bf16 packs 2 rows/sublane -> keep 2nd-minor dims 16-aligned


def _round_up(n, m):
    return ((n + m - 1) // m) * m


def _cdiv(a, b):
    return (a + b - 1) // b


def _mlp_kernel(n_layers, *refs):
    """refs = (x, w0, b0, ..., w_out, b_out, o).

    x: (TB, IN_P) bf16   w_i: (K_P, N_P) bf16   b_i: (1, N_P) f32   o: (TB, 1) f32
    """
    x_ref = refs[0]
    o_ref = refs[-1]
    params = refs[1:-1]

    h = x_ref[...]                                    # bf16 activations
    for i in range(n_layers + 1):
        w = params[2 * i][...]                        # bf16, VMEM-resident
        b = params[2 * i + 1][...]                    # f32 (1, N_P)
        # bf16 x bf16 on the MXU, f32 accumulation; bias add stays f32.
        h = jnp.dot(h, w, preferred_element_type=jnp.float32) + b
        if i < n_layers:                              # Dropout (identity, eval) -> ReLU
            h = jnp.maximum(h, 0.0).astype(jnp.bfloat16)
    # Only column 0 of the 128-lane-padded final layer is real.
    o_ref[...] = h[:, :1]


def init_params(key, input_size, hidden_size, n_layers):
    """PyTorch-style U(-1/sqrt(fan_in), +1/sqrt(fan_in)) init.

    Weights stored (in, out) bf16. The input-feature dim is only padded to a
    16-multiple; hidden and output feature dims are zero-padded to 128-lane
    multiples (final layer 1 -> 128, only column 0 is real). Biases stay f32,
    shape (1, padded_out).
    """
    dims = [input_size] + [hidden_size] * n_layers + [1]
    pdims = [_round_up(input_size, SUBLANE_BF16)] + \
            [_round_up(d, LANE) for d in dims[1:]]
    params = []
    for i in range(len(dims) - 1):
        fan_in, fan_out = dims[i], dims[i + 1]
        p_in, p_out = pdims[i], pdims[i + 1]
        key, kw, kb = jax.random.split(key, 3)
        bound = 1.0 / float(fan_in) ** 0.5
        w = jax.random.uniform(kw, (fan_in, fan_out), jnp.float32,
                               minval=-bound, maxval=bound)
        b = jax.random.uniform(kb, (fan_out,), jnp.float32,
                               minval=-bound, maxval=bound)
        w_p = jnp.zeros((p_in, p_out), jnp.float32).at[:fan_in, :fan_out].set(w)
        b_p = jnp.zeros((1, p_out), jnp.float32).at[0, :fan_out].set(b)
        # Correctness of the lane/feature padding relies on padded rows/cols
        # and padded biases being EXACTLY zero (ReLU(0) == 0).
        assert float(jnp.abs(w_p[fan_in:, :]).sum()) == 0.0
        assert float(jnp.abs(w_p[:, fan_out:]).sum()) == 0.0
        assert float(jnp.abs(b_p[:, fan_out:]).sum()) == 0.0
        params += [w_p.astype(jnp.bfloat16), b_p]
    return params


def _vmem_cap_bytes():
    """Per-generation VMEM budget: physical capacity minus Mosaic headroom."""
    try:
        cap = int(pltpu.get_tpu_info().vmem_capacity_bytes)
    except Exception:
        cap = 64 << 20                      # conservative (v7x-sized) fallback
    headroom = max(cap // 6, 8 << 20)       # ~53 MiB on v7x, ~107 MiB on v5e/v6e
    return max(cap - headroom, 32 << 20)


def _choose_tiling(batch, block_batch):
    """Batch tile size & grid length.

    Small batches -> one fat tile (per-step overhead ~0.35us, MXU underfill).
    Large batches -> ~block_batch-row tiles with an EVEN tile count so v7x's
    two TensorCores both get work along the 'parallel' batch axis.
    """
    b_aligned = _round_up(batch, SUBLANE_BF16)
    if b_aligned <= block_batch:
        return b_aligned, 1
    n_tiles = _cdiv(b_aligned, block_batch)
    if n_tiles % 2:
        n_tiles += 1
    tb = _round_up(_cdiv(b_aligned, n_tiles), SUBLANE_BF16)
    return tb, n_tiles


def _param_specs(params, buffered):
    specs = []
    for p in params:
        if buffered:
            # Constant index_map -> DMA'd once; Buffered(1) avoids allocating a
            # second (never-used) VMEM buffer per resident weight/bias.
            specs.append(pl.BlockSpec(p.shape, lambda i: (0, 0),
                                      pipeline_mode=pl.Buffered(1)))
        else:
            specs.append(pl.BlockSpec(p.shape, lambda i: (0, 0)))
    return specs


def mlp_forward(x, params, n_layers, *, block_batch=512):
    """x: (batch, input_size) f32; params: padded [w0, b0, ..., w_out, b_out]."""
    batch, in_features = x.shape
    in_p = int(params[0].shape[0])

    tb, n_tiles = _choose_tiling(batch, block_batch)
    batch_p = tb * n_tiles

    # Pad batch rows only and stream x as bf16: no 8-16x lane inflation of the
    # x stream, and the wrapper-side copy is half the bytes of an f32 pad.
    x_p = jnp.zeros((batch_p, in_p), jnp.bfloat16)
    x_p = x_p.at[:batch, :in_features].set(x.astype(jnp.bfloat16))

    x_spec = pl.BlockSpec((tb, in_p), lambda i: (i, 0))
    # (tb, 1) output: 4 B of HBM writeback per row instead of 512 B.
    out_spec = pl.BlockSpec((tb, 1), lambda i: (i, 0))

    # Advisory cost estimate for XLA's scheduler.
    flops = 2 * batch_p * sum(
        int(params[2 * i].shape[0]) * int(params[2 * i].shape[1])
        for i in range(n_layers + 1))
    param_bytes = sum(int(p.size) * p.dtype.itemsize for p in params)
    bytes_accessed = int(x_p.size) * 2 + batch_p * 4 + param_bytes
    cost = pl.CostEstimate(flops=flops, transcendentals=0,
                           bytes_accessed=bytes_accessed)

    # VMEM budget: resident params (x2 in case the Buffered(1) path falls back
    # to double-buffering) + double-buffered x/out tiles + f32 intermediates,
    # clamped to the per-generation cap.
    widest = max(int(params[2 * i].shape[1]) for i in range(n_layers + 1))
    tile_bytes = 2 * (tb * in_p * 2 + tb * LANE * 4)
    live_bytes = 3 * tb * widest * 4
    vmem_limit = int(min(max(2 * param_bytes + tile_bytes + live_bytes + (4 << 20),
                             16 << 20),
                         _vmem_cap_bytes()))

    def call(param_specs):
        return pl.pallas_call(
            functools.partial(_mlp_kernel, n_layers),
            out_shape=jax.ShapeDtypeStruct((batch_p, 1), jnp.float32),
            grid=(n_tiles,),
            in_specs=[x_spec] + list(param_specs),
            out_specs=out_spec,
            compiler_params=pltpu.CompilerParams(
                dimension_semantics=("parallel",),   # shards batch across v7x's 2 TCs
                vmem_limit_bytes=vmem_limit),
            cost_estimate=cost,
        )(x_p, *params)

    try:
        out_padded = call(_param_specs(params, buffered=True))
    except Exception:
        # pipeline_mode=pl.Buffered(1) not supported by this jax build:
        # fall back to default double-buffered resident params.
        out_padded = call(_param_specs(params, buffered=False))

    return out_padded[:batch]


def reference_forward(x, params, n_layers):
    """Pure-JAX reference with the same bf16 weights/activations, f32 accumulate."""
    batch, in_features = x.shape
    in_p = int(params[0].shape[0])
    h = jnp.zeros((batch, in_p), jnp.float32).at[:, :in_features].set(
        x.astype(jnp.float32))
    h = h.astype(jnp.bfloat16).astype(jnp.float32)
    for i in range(n_layers + 1):
        w = params[2 * i].astype(jnp.float32)
        b = params[2 * i + 1]
        h = jnp.dot(h, w, preferred_element_type=jnp.float32) + b
        if i < n_layers:
            h = jnp.maximum(h, 0.0)
            h = h.astype(jnp.bfloat16).astype(jnp.float32)
    return h[:, :1]


if __name__ == "__main__":
    # Shapes consistent with Torch_model(input_size=16, hidden_size=32,
    # n_layers=2, dropout, solver, activation): dropout is identity in eval;
    # solver / activation ctor args do not affect the forward graph as written.
    batch = 40
    input_size = 16
    hidden_size = 32
    n_layers = 2

    key = jax.random.PRNGKey(0)
    key, kx = jax.random.split(key)
    x = jax.random.normal(kx, (batch, input_size), jnp.float32)
    params = init_params(key, input_size, hidden_size, n_layers)

    # Default block_batch=512 -> one fat 48-row tile for this toy batch.
    out = jax.block_until_ready(mlp_forward(x, params, n_layers))
    ref = reference_forward(x, params, n_layers)
    assert out.shape == (batch, 1)
    assert jnp.allclose(out, ref, atol=2e-3, rtol=2e-3), (
        float(jnp.max(jnp.abs(out - ref))))

    # Also exercise the multi-tile path (even grid length, 'parallel' axis).
    key, kx2 = jax.random.split(key)
    x2 = jax.random.normal(kx2, (600, input_size), jnp.float32)
    out2 = jax.block_until_ready(mlp_forward(x2, params, n_layers, block_batch=512))
    ref2 = reference_forward(x2, params, n_layers)
    assert out2.shape == (600, 1)
    assert jnp.allclose(out2, ref2, atol=2e-3, rtol=2e-3), (
        float(jnp.max(jnp.abs(out2 - ref2))))

    print("KERNEL_OK")
</pallas_src>

<mosaic_0001>
module attributes {stable_mosaic.version = 11 : i64} {
  func.func @_mlp_kernel(%arg0: i32, %arg1: memref<48x16xbf16, #tpu.memory_space<vmem>>, %arg2: memref<16x128xbf16, #tpu.memory_space<vmem>>, %arg3: memref<1x128xf32, #tpu.memory_space<vmem>>, %arg4: memref<128x128xbf16, #tpu.memory_space<vmem>>, %arg5: memref<1x128xf32, #tpu.memory_space<vmem>>, %arg6: memref<128x128xbf16, #tpu.memory_space<vmem>>, %arg7: memref<1x128xf32, #tpu.memory_space<vmem>>, %arg8: memref<48x1xf32, #tpu.memory_space<vmem>>) attributes {dimension_semantics = [#tpu.dimension_semantics<parallel>], iteration_bounds = array<i64: 1>, scalar_prefetch = 0 : i64, scratch_operands = 0 : i64, tpu.core_type = #tpu.core_type<tc>, window_params = [{transform_indices = @transform_0, window_bounds = array<i64: 48, 16>}, {pipeline_mode = #tpu.pipeline_mode<synchronous>, transform_indices = @transform_1, window_bounds = array<i64: 16, 128>}, {pipeline_mode = #tpu.pipeline_mode<synchronous>, transform_indices = @transform_2, window_bounds = array<i64: 1, 128>}, {pipeline_mode = #tpu.pipeline_mode<synchronous>, transform_indices = @transform_3, window_bounds = array<i64: 128, 128>}, {pipeline_mode = #tpu.pipeline_mode<synchronous>, transform_indices = @transform_4, window_bounds = array<i64: 1, 128>}, {pipeline_mode = #tpu.pipeline_mode<synchronous>, transform_indices = @transform_5, window_bounds = array<i64: 128, 128>}, {pipeline_mode = #tpu.pipeline_mode<synchronous>, transform_indices = @transform_6, window_bounds = array<i64: 1, 128>}, {transform_indices = @transform_7, window_bounds = array<i64: 48, 1>}]} {
    %c0 = arith.constant 0 : index
    %c0_0 = arith.constant 0 : index
    %0 = vector.load %arg1[%c0, %c0_0] : memref<48x16xbf16, #tpu.memory_space<vmem>>, vector<48x16xbf16>
    %c0_1 = arith.constant 0 : index
    %c0_2 = arith.constant 0 : index
    %1 = vector.load %arg2[%c0_1, %c0_2] : memref<16x128xbf16, #tpu.memory_space<vmem>>, vector<16x128xbf16>
    %c0_3 = arith.constant 0 : index
    %c0_4 = arith.constant 0 : index
    %2 = vector.load %arg3[%c0_3, %c0_4] : memref<1x128xf32, #tpu.memory_space<vmem>>, vector<1x128xf32>
    %cst = arith.constant dense<0.000000e+00> : vector<48x128xf32>
    %3 = tpu.matmul %0, %1, %cst {dimension_numbers = #tpu.dot_dimension_numbers<[1], [0], [0], [1], [0, 0, 1, 1], [], []>} : vector<48x16xbf16>, vector<16x128xbf16>, vector<48x128xf32> -> vector<48x128xf32>
    %4 = vector.broadcast %2 : vector<1x128xf32> to vector<48x128xf32>
    %5 = arith.addf %3, %4 : vector<48x128xf32>
    %cst_5 = arith.constant 0.000000e+00 : f32
    %6 = vector.broadcast %cst_5 : f32 to vector<48x128xf32>
    %7 = arith.maximumf %5, %6 : vector<48x128xf32>
    %8 = arith.truncf %7 : vector<48x128xf32> to vector<48x128xbf16>
    %c0_6 = arith.constant 0 : index
    %c0_7 = arith.constant 0 : index
    %9 = vector.load %arg4[%c0_6, %c0_7] : memref<128x128xbf16, #tpu.memory_space<vmem>>, vector<128x128xbf16>
    %c0_8 = arith.constant 0 : index
    %c0_9 = arith.constant 0 : index
    %10 = vector.load %arg5[%c0_8, %c0_9] : memref<1x128xf32, #tpu.memory_space<vmem>>, vector<1x128xf32>
    %cst_10 = arith.constant dense<0.000000e+00> : vector<48x128xf32>
    %11 = tpu.matmul %8, %9, %cst_10 {dimension_numbers = #tpu.dot_dimension_numbers<[1], [0], [0], [1], [0, 0, 1, 1], [], []>} : vector<48x128xbf16>, vector<128x128xbf16>, vector<48x128xf32> -> vector<48x128xf32>
    %12 = vector.broadcast %10 : vector<1x128xf32> to vector<48x128xf32>
    %13 = arith.addf %11, %12 : vector<48x128xf32>
    %cst_11 = arith.constant 0.000000e+00 : f32
    %14 = vector.broadcast %cst_11 : f32 to vector<48x128xf32>
    %15 = arith.maximumf %13, %14 : vector<48x128xf32>
    %16 = arith.truncf %15 : vector<48x128xf32> to vector<48x128xbf16>
    %c0_12 = arith.constant 0 : index
    %c0_13 = arith.constant 0 : index
    %17 = vector.load %arg6[%c0_12, %c0_13] : memref<128x128xbf16, #tpu.memory_space<vmem>>, vector<128x128xbf16>
    %c0_14 = arith.constant 0 : index
    %c0_15 = arith.constant 0 : index
    %18 = vector.load %arg7[%c0_14, %c0_15] : memref<1x128xf32, #tpu.memory_space<vmem>>, vector<1x128xf32>
    %cst_16 = arith.constant dense<0.000000e+00> : vector<48x128xf32>
    %19 = tpu.matmul %16, %17, %cst_16 {dimension_numbers = #tpu.dot_dimension_numbers<[1], [0], [0], [1], [0, 0, 1, 1], [], []>} : vector<48x128xbf16>, vector<128x128xbf16>, vector<48x128xf32> -> vector<48x128xf32>
    %20 = vector.broadcast %18 : vector<1x128xf32> to vector<48x128xf32>
    %21 = arith.addf %19, %20 : vector<48x128xf32>
    %22 = vector.extract_strided_slice %21 {offsets = [0, 0], sizes = [48, 1], strides = [1, 1]} : vector<48x128xf32> to vector<48x1xf32>
    %c0_17 = arith.constant 0 : index
    %c0_18 = arith.constant 0 : index
    %23 = vector.load %arg8[%c0_17, %c0_18] : memref<48x1xf32, #tpu.memory_space<vmem>>, vector<48x1xf32>
    tpu.vector_store %arg8[%c0_17, %c0_18], %22 {strides = array<i32>} : memref<48x1xf32, #tpu.memory_space<vmem>>, vector<48x1xf32>,
    return
  }
  func.func @transform_0(%arg0: i32) -> (i32, i32) {
    %c0_i32 = arith.constant 0 : i32
    %c0_i32_0 = arith.constant 0 : i32
    return %arg0, %c0_i32 : i32, i32
  }
  func.func @transform_1(%arg0: i32) -> (i32, i32) {
    %c0_i32 = arith.constant 0 : i32
    %c0_i32_0 = arith.constant 0 : i32
    %c0_i32_1 = arith.constant 0 : i32
    return %c0_i32, %c0_i32_0 : i32, i32
  }
  func.func @transform_2(%arg0: i32) -> (i32, i32) {
    %c0_i32 = arith.constant 0 : i32
    %c0_i32_0 = arith.constant 0 : i32
    %c0_i32_1 = arith.constant 0 : i32
    return %c0_i32, %c0_i32_0 : i32, i32
  }
  func.func @transform_3(%arg0: i32) -> (i32, i32) {
    %c0_i32 = arith.constant 0 : i32
    %c0_i32_0 = arith.constant 0 : i32
    %c0_i32_1 = arith.constant 0 : i32
    return %c0_i32, %c0_i32_0 : i32, i32
  }
  func.func @transform_4(%arg0: i32) -> (i32, i32) {
    %c0_i32 = arith.constant 0 : i32
    %c0_i32_0 = arith.constant 0 : i32
    %c0_i32_1 = arith.constant 0 : i32
    return %c0_i32, %c0_i32_0 : i32, i32
  }
  func.func @transform_5(%arg0: i32) -> (i32, i32) {
    %c0_i32 = arith.constant 0 : i32
    %c0_i32_0 = arith.constant 0 : i32
    %c0_i32_1 = arith.constant 0 : i32
    return %c0_i32, %c0_i32_0 : i32, i32
  }
  func.func @transform_6(%arg0: i32) -> (i32, i32) {
    %c0_i32 = arith.constant 0 : i32
    %c0_i32_0 = arith.constant 0 : i32
    %c0_i32_1 = arith.constant 0 : i32
    return %c0_i32, %c0_i32_0 : i32, i32
  }
  func.func @transform_7(%arg0: i32) -> (i32, i32) {
    %c0_i32 = arith.constant 0 : i32
    %c0_i32_0 = arith.constant 0 : i32
    return %arg0, %c0_i32 : i32, i32
  }
}

module attributes {stable_mosaic.version = 11 : i64} {
  func.func @_mlp_kernel(%arg0: i32, %arg1: memref<48x16xbf16, #tpu.memory_space<vmem>>, %arg2: memref<16x128xbf16, #tpu.memory_space<vmem>>, %arg3: memref<1x128xf32, #tpu.memory_space<vmem>>, %arg4: memref<128x128xbf16, #tpu.memory_space<vmem>>, %arg5: memref<1x128xf32, #tpu.memory_space<vmem>>, %arg6: memref<128x128xbf16, #tpu.memory_space<vmem>>, %arg7: memref<1x128xf32, #tpu.memory_space<vmem>>, %arg8: memref<48x1xf32, #tpu.memory_space<vmem>>) attributes {dimension_semantics = [#tpu.dimension_semantics<parallel>], iteration_bounds = array<i64: 1>, scalar_prefetch = 0 : i64, scratch_operands = 0 : i64, tpu.core_type = #tpu.core_type<tc>, window_params = [{transform_indices = @transform_0, window_bounds = array<i64: 48, 16>}, {pipeline_mode = #tpu.pipeline_mode<synchronous>, transform_indices = @transform_1, window_bounds = array<i64: 16, 128>}, {pipeline_mode = #tpu.pipeline_mode<synchronous>, transform_indices = @transform_2, window_bounds = array<i64: 1, 128>}, {pipeline_mode = #tpu.pipeline_mode<synchronous>, transform_indices = @transform_3, window_bounds = array<i64: 128, 128>}, {pipeline_mode = #tpu.pipeline_mode<synchronous>, transform_indices = @transform_4, window_bounds = array<i64: 1, 128>}, {pipeline_mode = #tpu.pipeline_mode<synchronous>, transform_indices = @transform_5, window_bounds = array<i64: 128, 128>}, {pipeline_mode = #tpu.pipeline_mode<synchronous>, transform_indices = @transform_6, window_bounds = array<i64: 1, 128>}, {transform_indices = @transform_7, window_bounds = array<i64: 48, 1>}]} {
    %c0 = arith.constant 0 : index
    %c0_0 = arith.constant 0 : index
    %0 = vector.load %arg1[%c0, %c0_0] : memref<48x16xbf16, #tpu.memory_space<vmem>>, vector<48x16xbf16>
    %c0_1 = arith.constant 0 : index
    %c0_2 = arith.constant 0 : index
    %1 = vector.load %arg2[%c0_1, %c0_2] : memref<16x128xbf16, #tpu.memory_space<vmem>>, vector<16x128xbf16>
    %c0_3 = arith.constant 0 : index
    %c0_4 = arith.constant 0 : index
    %2 = vector.load %arg3[%c0_3, %c0_4] : memref<1x128xf32, #tpu.memory_space<vmem>>, vector<1x128xf32>
    %cst = arith.constant dense<0.000000e+00> : vector<48x128xf32>
    %3 = tpu.matmul %0, %1, %cst {dimension_numbers = #tpu.dot_dimension_numbers<[1], [0], [0], [1], [0, 0, 1, 1], [], []>} : vector<48x16xbf16>, vector<16x128xbf16>, vector<48x128xf32> -> vector<48x128xf32>
    %4 = vector.broadcast %2 : vector<1x128xf32> to vector<48x128xf32>
    %5 = arith.addf %3, %4 : vector<48x128xf32>
    %cst_5 = arith.constant 0.000000e+00 : f32
    %6 = vector.broadcast %cst_5 : f32 to vector<48x128xf32>
    %7 = arith.maximumf %5, %6 : vector<48x128xf32>
    %8 = arith.truncf %7 : vector<48x128xf32> to vector<48x128xbf16>
    %c0_6 = arith.constant 0 : index
    %c0_7 = arith.constant 0 : index
    %9 = vector.load %arg4[%c0_6, %c0_7] : memref<128x128xbf16, #tpu.memory_space<vmem>>, vector<128x128xbf16>
    %c0_8 = arith.constant 0 : index
    %c0_9 = arith.constant 0 : index
    %10 = vector.load %arg5[%c0_8, %c0_9] : memref<1x128xf32, #tpu.memory_space<vmem>>, vector<1x128xf32>
    %cst_10 = arith.constant dense<0.000000e+00> : vector<48x128xf32>
    %11 = tpu.matmul %8, %9, %cst_10 {dimension_numbers = #tpu.dot_dimension_numbers<[1], [0], [0], [1], [0, 0, 1, 1], [], []>} : vector<48x128xbf16>, vector<128x128xbf16>, vector<48x128xf32> -> vector<48x128xf32>
    %12 = vector.broadcast %10 : vector<1x128xf32> to vector<48x128xf32>
    %13 = arith.addf %11, %12 : vector<48x128xf32>
    %cst_11 = arith.constant 0.000000e+00 : f32
    %14 = vector.broadcast %cst_11 : f32 to vector<48x128xf32>
    %15 = arith.maximumf %13, %14 : vector<48x128xf32>
    %16 = arith.truncf %15 : vector<48x128xf32> to vector<48x128xbf16>
    %c0_12 = arith.constant 0 : index
    %c0_13 = arith.constant 0 : index
    %17 = vector.load %arg6[%c0_12, %c0_13] : memref<128x128xbf16, #tpu.memory_space<vmem>>, vector<128x128xbf16>
    %c0_14 = arith.constant 0 : index
    %c0_15 = arith.constant 0 : index
    %18 = vector.load %arg7[%c0_14, %c0_15] : memref<1x128xf32, #tpu.memory_space<vmem>>, vector<1x128xf32>
    %cst_16 = arith.constant dense<0.000000e+00> : vector<48x128xf32>
    %19 = tpu.matmul %16, %17, %cst_16 {dimension_numbers = #tpu.dot_dimension_numbers<[1], [0], [0], [1], [0, 0, 1, 1], [], []>} : vector<48x128xbf16>, vector<128x128xbf16>, vector<48x128xf32> -> vector<48x128xf32>
    %20 = vector.broadcast %18 : vector<1x128xf32> to vector<48x128xf32>
    %21 = arith.addf %19, %20 : vector<48x128xf32>
    %22 = vector.extract_strided_slice %21 {offsets = [0, 0], sizes = [48, 1], strides = [1, 1]} : vector<48x128xf32> to vector<48x1xf32>
    %c0_17 = arith.constant 0 : index
    %c0_18 = arith.constant 0 : index
    %23 = vector.load %arg8[%c0_17, %c0_18] : memref<48x1xf32, #tpu.memory_space<vmem>>, vector<48x1xf32>
    tpu.vector_store %arg8[%c0_17, %c0_18], %22 {strides = array<i32>} : memref<48x1xf32, #tpu.memory_space<vmem>>, vector<48x1xf32>,
    return
  }
  func.func @transform_0(%arg0: i32) -> (i32, i32) {
    %c0_i32 = arith.constant 0 : i32
    %c0_i32_0 = arith.constant 0 : i32
    return %arg0, %c0_i32 : i32, i32
  }
  func.func @transform_1(%arg0: i32) -> (i32, i32) {
    %c0_i32 = arith.constant 0 : i32
    %c0_i32_0 = arith.constant 0 : i32
    %c0_i32_1 = arith.constant 0 : i32
    return %c0_i32, %c0_i32_0 : i32, i32
  }
  func.func @transform_2(%arg0: i32) -> (i32, i32) {
    %c0_i32 = arith.constant 0 : i32
    %c0_i32_0 = arith.constant 0 : i32
    %c0_i32_1 = arith.constant 0 : i32
    return %c0_i32, %c0_i32_0 : i32, i32
  }
  func.func @transform_3(%arg0: i32) -> (i32, i32) {
    %c0_i32 = arith.constant 0 : i32
    %c0_i32_0 = arith.constant 0 : i32
    %c0_i32_1 = arith.constant 0 : i32
    return %c0_i32, %c0_i32_0 : i32, i32
  }
  func.func @transform_4(%arg0: i32) -> (i32, i32) {
    %c0_i32 = arith.constant 0 : i32
    %c0_i32_0 = arith.constant 0 : i32
    %c0_i32_1 = arith.constant 0 : i32
    return %c0_i32, %c0_i32_0 : i32, i32
  }
  func.func @transform_5(%arg0: i32) -> (i32, i32) {
    %c0_i32 = arith.constant 0 : i32
    %c0_i32_0 = arith.constant 0 : i32
    %c0_i32_1 = arith.constant 0 : i32
    return %c0_i32, %c0_i32_0 : i32, i32
  }
  func.func @transform_6(%arg0: i32) -> (i32, i32) {
    %c0_i32 = arith.constant 0 : i32
    %c0_i32_0 = arith.constant 0 : i32
    %c0_i32_1 = arith.constant 0 : i32
    return %c0_i32, %c0_i32_0 : i32, i32
  }
  func.func @transform_7(%arg0: i32) -> (i32, i32) {
    %c0_i32 = arith.constant 0 : i32
    %c0_i32_0 = arith.constant 0 : i32
    return %arg0, %c0_i32 : i32, i32
  }
}

</mosaic_0001>

<bundles_post_ra>
// kernel: tpu_custom_call.1
= control target key start
LH: loop header
LB: loop body
LE: loop exit
PB: predicated region body
PF: predicated region fallthrough
CT: control target
= control target key end

     0   :  { %12 = vsyncpa [#allocation3], 0  ;;  %s772_s0 = inlined_call_operand.vmem [shape: bf16[48,16], index: 0, kind: input, shape index: {}]   ;;  %s773_s1 = inlined_call_operand.vmem [shape: bf16[16,128], index: 1, kind: input, shape index: {}]   ;;  %s774_s2 = inlined_call_operand.vmem [shape: f32[1,128], index: 2, kind: input, shape index: {}]   ;;  %s775_s3 = inlined_call_operand.hbm [shape: bf16[128,128], index: 3, kind: input, shape index: {}]   ;;  %s776_s4 = inlined_call_operand.vmem [shape: f32[1,128], index: 4, kind: input, shape index: {}]   ;;  %s777_s5 = inlined_call_operand.hbm [shape: bf16[128,128], index: 5, kind: input, shape index: {}]   ;;  %s778_s6 = inlined_call_operand.vmem [shape: f32[1,128], index: 6, kind: input, shape index: {}]   ;;  %s779_s7 = inlined_call_operand.vmem [shape: f32[48,1], index: 7, kind: output, shape index: {}]  }
   0x1   :  { %13 = vsyncpa [#allocation5], 0  ;;  %s637_s24 = smov [#allocation2]  }
   0x2   :  { %s25_s25 = sshll.u32 %s637_s24, 4  ;;  %s26_s25 = int_to_ptr.vmem [resolvable:$true] %s25_s25 }
   0x3   :  { %s601_s26 = scalar_lea.vmem %s26_s25, 1024  ;;  %p606_p1 = scmp.lt.s32.totalorder %s26_s25, %s26_s25 }
   0x4   :  { %p602_p0 = scmp.ne.s32.totalorder %s26_s25, %s601_s26  ;;  %p607_p2 = scmp.lt.s32.totalorder %s601_s26, %s601_s26 }
   0x6   :  { %p608_p3 = por %p607_p2, %p606_p1 }
   0x8   :  { %p609_p4 = pnand %p608_p3, %p602_p0 }
   0xa   :  { %612 = shalt.err (!%p609_p4)
}
   0xb   :  { %s638_s27 = smov 64   ;;  %s639_s28 = smov 4  }
   0xc   :  { %31 = dma.hbm_to_vmem [thread:$0]  %s775_s3, 1024, %s26_s25, [#allocation3], %s638_s27, %s638_s27, %s639_s28  }
   0xd   :  { %s640_s8 = smov [#allocation4]  }
   0xe   :  { %s39_s9 = sshll.u32 %s640_s8, 4  ;;  %s40_s9 = int_to_ptr.vmem [resolvable:$true] %s39_s9 }
   0xf   :  { %s621_s10 = scalar_lea.vmem %s40_s9, 1024  ;;  %p626_p6 = scmp.lt.s32.totalorder %s40_s9, %s40_s9 }
  0x10   :  { %p622_p5 = scmp.ne.s32.totalorder %s40_s9, %s621_s10  ;;  %p627_p7 = scmp.lt.s32.totalorder %s621_s10, %s621_s10 }
  0x12   :  { %p628_p8 = por %p627_p7, %p626_p6 }
  0x14   :  { %p629_p9 = pnand %p628_p8, %p622_p5 }
  0x16   :  { %632 = shalt.err (!%p629_p9)
}
  0x17   :  { %45 = dma.hbm_to_vmem [thread:$0]  %s777_s5, 1024, %s40_s9, [#allocation5], %s638_s27, %s638_s27, %s639_s28  }
  0x18   :  { %633 = dma.done.wait [#allocation3], 1024  }
  0x19   :  { %634 = vsyncadd [#allocation3], 4294966272 }
  0x1a   :  { %635 = dma.done.wait [#allocation5], 1024  }
  0x1b   :  { %636 = vsyncadd [#allocation5], 4294966272  ;;  %v641_v0 = vmov 0.0   ;;  %vm642_vm0 = vmmov 0   ;;  %v573_v1 = vld [vmem:[%s773_s1] sm:$0xff]   ;;  %vm91_vm1 = vcmask 130048  }
  0x1c   :  { %497 = vmatprep.subr.bf16.mxu0 %v641_v0  ;;  %499 = vmatprep.mubr.msk.bf16.mxu0 %vm642_vm0, %v641_v0  ;;  %v574_v2 = vld [vmem:[%s772_s0] sm:$0xff]   ;;  %v577_v3 = vld [vmem:[#allocation2 + $0x38] sm:$0xff]   ;;  %v578_v4 = vld [vmem:[#allocation2 + $0x30] sm:$0xff]   ;;  %vm432_vm2 = vcmask 7168  }
  0x1d   :  { %511 = vmatprep.subr.bf16.mxu1 %v641_v0  ;;  %527 = vmatprep.mubr.msk.bf16.mxu1 %vm642_vm0, %v641_v0  ;;  %v575_v5 = vld [vmem:[%s772_s0 + $0x8] sm:$0xff]   ;;  %v580_v7 = vld [vmem:[#allocation2 + $0x20] sm:$0xff]   ;;  %v576_v8 = vld [vmem:[%s772_s0 + $0x10] sm:$0xff]  }
  0x1e   :  { %498 = vmatpush3.bf16.msra.mxu0 %v573_v1  ;;  %512 = vmatpush3.bf16.msra.mxu1 %v577_v3  ;;  %v579_v6 = vld [vmem:[#allocation2 + $0x28] sm:$0xff]   ;;  %v581_v9 = vld [vmem:[#allocation2 + $0x18] sm:$0xff]   ;;  %v582_v10 = vld [vmem:[#allocation2 + $0x10] sm:$0xff]  }
  0x1f   :  { %539 = vmatprep.subr.bf16.mxu0 %v641_v0  ;;  %513 = vmatprep.subr.bf16.mxu1 %v641_v0  ;;  %v583_v11 = vld [vmem:[#allocation2 + $0x8] sm:$0xff]   ;;  %v584_v12 = vld [vmem:[#allocation2] sm:$0xff]   ;;  %v585_v13 = vld [vmem:[#allocation4 + $0x38] sm:$0xff]  }
  0x20   :  { %v586_v14 = vld [vmem:[#allocation4 + $0x30] sm:$0xff]   ;;  %v587_v15 = vld [vmem:[#allocation4 + $0x28] sm:$0xff]   ;;  %v588_v16 = vld [vmem:[#allocation4 + $0x20] sm:$0xff]  }
  0x21   :  { %500 = vmatmul.mubr.msk.bf16.vlgmr.msra.gmra.mxu0 %vm91_vm1, %v574_v2  ;;  %v589_v17 = vld [vmem:[#allocation4 + $0x18] sm:$0xff]   ;;  %v445_v18 = vld [vmem:[%s774_s2] ss:$0 sm:$0xff]  ;;  %v590_v46 = vld [vmem:[#allocation4 + $0x10] sm:$0xff]  }
  0x22   :  { %503 = vmatprep.mubr.msk.bf16.mxu0 %vm642_vm0, %v641_v0  ;;  %514 = vmatpush3.bf16.msra.mxu1 %v578_v4  ;;  %v591_v47 = vld [vmem:[#allocation4 + $0x8] sm:$0xff]   ;;  %v592_v48 = vld [vmem:[#allocation4] sm:$0xff]  }
  0x23   :  { %515 = vmatprep.subr.bf16.mxu1 %v641_v0  ;;  %540 = vmatpush3.bf16.msra.mxu0 %v585_v13  ;;  %v453_v49 = vld [vmem:[%s776_s4] ss:$0 sm:$0xff] }
  0x24   :  { %541 = vmatprep.subr.bf16.mxu0 %v641_v0 }
  0x26   :  { %516 = vmatpush3.bf16.msra.mxu1 %v579_v6 }
  0x27   :  { %517 = vmatprep.subr.bf16.mxu1 %v641_v0  ;;  %542 = vmatpush3.bf16.msra.mxu0 %v586_v14  ;;  %v462_v14 = vld [vmem:[%s778_s6] ss:$0 sm:$0xff] }
  0x28   :  { %543 = vmatprep.subr.bf16.mxu0 %v641_v0 }
  0x29   :  { %504 = vmatmul.mubr.msk.bf16.gmra.mxu0 %vm91_vm1, %v575_v5 }
  0x2a   :  { %507 = vmatprep.mubr.msk.bf16.mxu0 %vm642_vm0, %v641_v0  ;;  %518 = vmatpush3.bf16.msra.mxu1 %v580_v7 }
  0x2b   :  { %519 = vmatprep.subr.bf16.mxu1 %v641_v0  ;;  %544 = vmatpush3.bf16.msra.mxu0 %v587_v15 }
  0x2c   :  { %545 = vmatprep.subr.bf16.mxu0 %v641_v0 }
  0x2e   :  { %520 = vmatpush3.bf16.msra.mxu1 %v581_v9 }
  0x2f   :  { %521 = vmatprep.subr.bf16.mxu1 %v641_v0  ;;  %546 = vmatpush3.bf16.msra.mxu0 %v588_v16 }
  0x30   :  { %547 = vmatprep.subr.bf16.mxu0 %v641_v0 }
  0x31   :  { %508 = vmatmul.mubr.msk.bf16.gmra.mxu0 %vm91_vm1, %v576_v8 }
  0x32   :  { %555 = vmatprep.mubr.msk.bf16.mxu0 %vm642_vm0, %v641_v0  ;;  %522 = vmatpush3.bf16.msra.mxu1 %v582_v10 }
  0x33   :  { %523 = vmatprep.subr.bf16.mxu1 %v641_v0  ;;  %548 = vmatpush3.bf16.msra.mxu0 %v589_v17 }
  0x34   :  { %549 = vmatprep.subr.bf16.mxu0 %v641_v0 }
  0x36   :  { %524 = vmatpush3.bf16.msra.mxu1 %v583_v11 }
  0x37   :  { %525 = vmatprep.subr.bf16.mxu1 %v641_v0  ;;  %550 = vmatpush3.bf16.msra.mxu0 %v590_v46 }
  0x38   :  { %551 = vmatprep.subr.bf16.mxu0 %v641_v0 }
  0x3a   :  { %526 = vmatpush3.bf16.msra.mxu1 %v584_v12 }
  0x3b   :  { %552 = vmatpush3.bf16.msra.mxu0 %v591_v47 }
  0x3c   :  { %553 = vmatprep.subr.bf16.mxu0 %v641_v0 }
  0x3f   :  { %554 = vmatpush3.bf16.msra.mxu0 %v592_v48 }
  0xe1   :  { %v135_v19 = vpop.f32.mrf.mxu0 }
  0xe2   :  { %v136_v21 = vadd.f32 %v445_v18, %v135_v19 }
  0xe3   :  { %v501_v20 = vpop.f32.mrf.mxu0 }
  0xe4   :  { %v158_v25 = vmax.f32 %v136_v21, 0.0 }
  0xe5   :  { %v138_v22 = vpop.f32.mrf.mxu0 }
  0xe6   :  { %v139_v23 = vadd.f32 %v445_v18, %v138_v22 }
  0xe7   :  { %v502_v24 = vpop.f32.mrf.mxu0 }
  0xe8   :  { %v159_v26 = vmax.f32 %v139_v23, 0.0 }
  0xe9   :  { %v143_v27 = vpop.f32.mrf.mxu0 }
  0xea   :  { %v164_v28 = vpack.c.bf16 %v159_v26, %v158_v25  ;;  %v144_v30 = vadd.f32 %v445_v18, %v143_v27 }
  0xeb   :  { %v505_v29 = vpop.f32.mrf.mxu0 }
  0xec   :  { %528 = vmatmul.mubr.bf16.vlgmr.msra.gmra.mxu1 %v164_v28  ;;  %v160_v34 = vmax.f32 %v144_v30, 0.0 }
  0xed   :  { %v146_v31 = vpop.f32.mrf.mxu0  ;;  %531 = vmatprep.mubr.msk.bf16.mxu1 %vm642_vm0, %v641_v0 }
  0xee   :  { %v147_v32 = vadd.f32 %v445_v18, %v146_v31 }
  0xef   :  { %v506_v33 = vpop.f32.mrf.mxu0 }
  0xf0   :  { %v161_v35 = vmax.f32 %v147_v32, 0.0 }
  0xf1   :  { %v151_v36 = vpop.f32.mrf.mxu0 }
  0xf2   :  { %v165_v37 = vpack.c.bf16 %v161_v35, %v160_v34  ;;  %v152_v39 = vadd.f32 %v445_v18, %v151_v36 }
  0xf3   :  { %v509_v38 = vpop.f32.mrf.mxu0 }
  0xf4   :  { %532 = vmatmul.mubr.bf16.gmra.mxu1 %v165_v37  ;;  %v162_v43 = vmax.f32 %v152_v39, 0.0 }
  0xf5   :  { %v154_v40 = vpop.f32.mrf.mxu0  ;;  %535 = vmatprep.mubr.msk.bf16.mxu1 %vm642_vm0, %v641_v0 }
  0xf6   :  { %v155_v41 = vadd.f32 %v445_v18, %v154_v40 }
  0xf7   :  { %v510_v42 = vpop.f32.mrf.mxu0 }
  0xf8   :  { %v163_v44 = vmax.f32 %v155_v41, 0.0 }
  0xfa   :  { %v166_v45 = vpack.c.bf16 %v163_v44, %v162_v43 }
  0xfc   :  { %536 = vmatmul.mubr.bf16.gmra.mxu1 %v166_v45 }
 0x1ac   :  { %v272_v50 = vpop.f32.mrf.mxu1 }
 0x1ad   :  { %v273_v52 = vadd.f32 %v453_v49, %v272_v50 }
 0x1ae   :  { %v529_v51 = vpop.f32.mrf.mxu1 }
 0x1af   :  { %v295_v56 = vmax.f32 %v273_v52, 0.0 }
 0x1b0   :  { %v275_v53 = vpop.f32.mrf.mxu1 }
 0x1b1   :  { %v276_v54 = vadd.f32 %v453_v49, %v275_v53 }
 0x1b2   :  { %v530_v55 = vpop.f32.mrf.mxu1 }
 0x1b3   :  { %v296_v57 = vmax.f32 %v276_v54, 0.0 }
 0x1b4   :  { %v280_v58 = vpop.f32.mrf.mxu1 }
 0x1b5   :  { %v301_v59 = vpack.c.bf16 %v296_v57, %v295_v56  ;;  %v281_v61 = vadd.f32 %v453_v49, %v280_v58 }
 0x1b6   :  { %v533_v60 = vpop.f32.mrf.mxu1 }
 0x1b7   :  { %556 = vmatmul.mubr.bf16.vlgmr.msra.gmra.mxu0 %v301_v59  ;;  %v297_v2 = vmax.f32 %v281_v61, 0.0 }
 0x1b8   :  { %v283_v62 = vpop.f32.mrf.mxu1  ;;  %559 = vmatprep.mubr.msk.bf16.mxu0 %vm642_vm0, %v641_v0 }
 0x1b9   :  { %v284_v63 = vadd.f32 %v453_v49, %v283_v62 }
 0x1ba   :  { %v534_v1 = vpop.f32.mrf.mxu1 }
 0x1bb   :  { %v298_v3 = vmax.f32 %v284_v63, 0.0 }
 0x1bc   :  { %v288_v4 = vpop.f32.mrf.mxu1 }
 0x1bd   :  { %v302_v5 = vpack.c.bf16 %v298_v3, %v297_v2  ;;  %v289_v7 = vadd.f32 %v453_v49, %v288_v4 }
 0x1be   :  { %v537_v6 = vpop.f32.mrf.mxu1 }
 0x1bf   :  { %560 = vmatmul.mubr.bf16.gmra.mxu0 %v302_v5  ;;  %v299_v11 = vmax.f32 %v289_v7, 0.0 }
 0x1c0   :  { %v291_v8 = vpop.f32.mrf.mxu1  ;;  %563 = vmatprep.mubr.msk.bf16.mxu0 %vm642_vm0, %v641_v0 }
 0x1c1   :  { %v292_v9 = vadd.f32 %v453_v49, %v291_v8 }
 0x1c2   :  { %v538_v10 = vpop.f32.mrf.mxu1 }
 0x1c3   :  { %v300_v12 = vmax.f32 %v292_v9, 0.0 }
 0x1c5   :  { %v303_v13 = vpack.c.bf16 %v300_v12, %v299_v11 }
 0x1c7   :  { %564 = vmatmul.mubr.bf16.gmra.mxu0 %v303_v13 }
 0x277   :  { %v409_v15 = vpop.f32.mrf.mxu0 }
 0x278   :  { %v410_v16 = vadd.f32 %v462_v14, %v409_v15 }
 0x279   :  { %v557_v17 = vpop.f32.mrf.mxu0 }
 0x27a   :  { %433 = vst.msk [vmem:[%s779_s7] sm:$0xff] %vm432_vm2, %v410_v16 }
 0x27b   :  { %v412_v0 = vpop.f32.mrf.mxu0 }
 0x27c   :  { %v413_v18 = vadd.f32 %v462_v14, %v412_v0 }
 0x27d   :  { %v558_v19 = vpop.f32.mrf.mxu0 }
 0x27e   :  { %434 = vst.msk [vmem:[%s779_s7 + $0x8] sm:$0xff] %vm432_vm2, %v413_v18 }
 0x27f   :  { %v417_v20 = vpop.f32.mrf.mxu0 }
 0x280   :  { %v418_v21 = vadd.f32 %v462_v14, %v417_v20 }
 0x281   :  { %v561_v22 = vpop.f32.mrf.mxu0 }
 0x282   :  { %435 = vst.msk [vmem:[%s779_s7 + $0x10] sm:$0xff] %vm432_vm2, %v418_v21 }
 0x283   :  { %v420_v23 = vpop.f32.mrf.mxu0 }
 0x284   :  { %v421_v24 = vadd.f32 %v462_v14, %v420_v23 }
 0x285   :  { %v562_v25 = vpop.f32.mrf.mxu0 }
 0x286   :  { %436 = vst.msk [vmem:[%s779_s7 + $0x18] sm:$0xff] %vm432_vm2, %v421_v24 }
 0x287   :  { %v425_v26 = vpop.f32.mrf.mxu0 }
 0x288   :  { %v426_v27 = vadd.f32 %v462_v14, %v425_v26 }
 0x289   :  { %v565_v28 = vpop.f32.mrf.mxu0 }
 0x28a   :  { %437 = vst.msk [vmem:[%s779_s7 + $0x20] sm:$0xff] %vm432_vm2, %v426_v27 }
 0x28b   :  { %v428_v29 = vpop.f32.mrf.mxu0 }
 0x28c   :  { %v429_v30 = vadd.f32 %v462_v14, %v428_v29 }
 0x28d   :  { %v566_v31 = vpop.f32.mrf.mxu0 }
 0x28e   :  { %438 = vst.msk [vmem:[%s779_s7 + $0x28] sm:$0xff] %vm432_vm2, %v429_v30 }
 0x28f   :  { %443 = vsyncpa [#allocation3], 1 }
 0x290   :  { %444 = vsyncpa [#allocation5], 1 }

// kernel: tpu_custom_call.1
= control target key start
LH: loop header
LB: loop body
LE: loop exit
PB: predicated region body
PF: predicated region fallthrough
CT: control target
= control target key end

     0   :  { %12 = vsyncpa [#allocation3], 0  ;;  %s772_s0 = inlined_call_operand.vmem [shape: bf16[48,16], index: 0, kind: input, shape index: {}]   ;;  %s773_s1 = inlined_call_operand.vmem [shape: bf16[16,128], index: 1, kind: input, shape index: {}]   ;;  %s774_s2 = inlined_call_operand.vmem [shape: f32[1,128], index: 2, kind: input, shape index: {}]   ;;  %s775_s3 = inlined_call_operand.hbm [shape: bf16[128,128], index: 3, kind: input, shape index: {}]   ;;  %s776_s4 = inlined_call_operand.vmem [shape: f32[1,128], index: 4, kind: input, shape index: {}]   ;;  %s777_s5 = inlined_call_operand.hbm [shape: bf16[128,128], index: 5, kind: input, shape index: {}]   ;;  %s778_s6 = inlined_call_operand.vmem [shape: f32[1,128], index: 6, kind: input, shape index: {}]   ;;  %s779_s7 = inlined_call_operand.vmem [shape: f32[48,1], index: 7, kind: output, shape index: {}]  }
   0x1   :  { %13 = vsyncpa [#allocation5], 0  ;;  %s637_s24 = smov [#allocation2]  }
   0x2   :  { %s25_s25 = sshll.u32 %s637_s24, 4  ;;  %s26_s25 = int_to_ptr.vmem [resolvable:$true] %s25_s25 }
   0x3   :  { %s601_s26 = scalar_lea.vmem %s26_s25, 1024  ;;  %p606_p1 = scmp.lt.s32.totalorder %s26_s25, %s26_s25 }
   0x4   :  { %p602_p0 = scmp.ne.s32.totalorder %s26_s25, %s601_s26  ;;  %p607_p2 = scmp.lt.s32.totalorder %s601_s26, %s601_s26 }
   0x6   :  { %p608_p3 = por %p607_p2, %p606_p1 }
   0x8   :  { %p609_p4 = pnand %p608_p3, %p602_p0 }
   0xa   :  { %612 = shalt.err (!%p609_p4)
}
   0xb   :  { %s638_s27 = smov 64   ;;  %s639_s28 = smov 4  }
   0xc   :  { %31 = dma.hbm_to_vmem [thread:$0]  %s775_s3, 1024, %s26_s25, [#allocation3], %s638_s27, %s638_s27, %s639_s28  }
   0xd   :  { %s640_s8 = smov [#allocation4]  }
   0xe   :  { %s39_s9 = sshll.u32 %s640_s8, 4  ;;  %s40_s9 = int_to_ptr.vmem [resolvable:$true] %s39_s9 }
   0xf   :  { %s621_s10 = scalar_lea.vmem %s40_s9, 1024  ;;  %p626_p6 = scmp.lt.s32.totalorder %s40_s9, %s40_s9 }
  0x10   :  { %p622_p5 = scmp.ne.s32.totalorder %s40_s9, %s621_s10  ;;  %p627_p7 = scmp.lt.s32.totalorder %s621_s10, %s621_s10 }
  0x12   :  { %p628_p8 = por %p627_p7, %p626_p6 }
  0x14   :  { %p629_p9 = pnand %p628_p8, %p622_p5 }
  0x16   :  { %632 = shalt.err (!%p629_p9)
}
  0x17   :  { %45 = dma.hbm_to_vmem [thread:$0]  %s777_s5, 1024, %s40_s9, [#allocation5], %s638_s27, %s638_s27, %s639_s28  }
  0x18   :  { %633 = dma.done.wait [#allocation3], 1024  }
  0x19   :  { %634 = vsyncadd [#allocation3], 4294966272 }
  0x1a   :  { %635 = dma.done.wait [#allocation5], 1024  }
  0x1b   :  { %636 = vsyncadd [#allocation5], 4294966272  ;;  %v641_v0 = vmov 0.0   ;;  %vm642_vm0 = vmmov 0   ;;  %v573_v1 = vld [vmem:[%s773_s1] sm:$0xff]   ;;  %vm91_vm1 = vcmask 130048  }
  0x1c   :  { %497 = vmatprep.subr.bf16.mxu0 %v641_v0  ;;  %499 = vmatprep.mubr.msk.bf16.mxu0 %vm642_vm0, %v641_v0  ;;  %v574_v2 = vld [vmem:[%s772_s0] sm:$0xff]   ;;  %v577_v3 = vld [vmem:[#allocation2 + $0x38] sm:$0xff]   ;;  %v578_v4 = vld [vmem:[#allocation2 + $0x30] sm:$0xff]   ;;  %vm432_vm2 = vcmask 7168  }
  0x1d   :  { %511 = vmatprep.subr.bf16.mxu1 %v641_v0  ;;  %527 = vmatprep.mubr.msk.bf16.mxu1 %vm642_vm0, %v641_v0  ;;  %v575_v5 = vld [vmem:[%s772_s0 + $0x8] sm:$0xff]   ;;  %v580_v7 = vld [vmem:[#allocation2 + $0x20] sm:$0xff]   ;;  %v576_v8 = vld [vmem:[%s772_s0 + $0x10] sm:$0xff]  }
  0x1e   :  { %498 = vmatpush3.bf16.msra.mxu0 %v573_v1  ;;  %512 = vmatpush3.bf16.msra.mxu1 %v577_v3  ;;  %v579_v6 = vld [vmem:[#allocation2 + $0x28] sm:$0xff]   ;;  %v581_v9 = vld [vmem:[#allocation2 + $0x18] sm:$0xff]   ;;  %v582_v10 = vld [vmem:[#allocation2 + $0x10] sm:$0xff]  }
  0x1f   :  { %539 = vmatprep.subr.bf16.mxu0 %v641_v0  ;;  %513 = vmatprep.subr.bf16.mxu1 %v641_v0  ;;  %v583_v11 = vld [vmem:[#allocation2 + $0x8] sm:$0xff]   ;;  %v584_v12 = vld [vmem:[#allocation2] sm:$0xff]   ;;  %v585_v13 = vld [vmem:[#allocation4 + $0x38] sm:$0xff]  }
  0x20   :  { %v586_v14 = vld [vmem:[#allocation4 + $0x30] sm:$0xff]   ;;  %v587_v15 = vld [vmem:[#allocation4 + $0x28] sm:$0xff]   ;;  %v588_v16 = vld [vmem:[#allocation4 + $0x20] sm:$0xff]  }
  0x21   :  { %500 = vmatmul.mubr.msk.bf16.vlgmr.msra.gmra.mxu0 %vm91_vm1, %v574_v2  ;;  %v589_v17 = vld [vmem:[#allocation4 + $0x18] sm:$0xff]   ;;  %v445_v18 = vld [vmem:[%s774_s2] ss:$0 sm:$0xff]  ;;  %v590_v46 = vld [vmem:[#allocation4 + $0x10] sm:$0xff]  }
  0x22   :  { %503 = vmatprep.mubr.msk.bf16.mxu0 %vm642_vm0, %v641_v0  ;;  %514 = vmatpush3.bf16.msra.mxu1 %v578_v4  ;;  %v591_v47 = vld [vmem:[#allocation4 + $0x8] sm:$0xff]   ;;  %v592_v48 = vld [vmem:[#allocation4] sm:$0xff]  }
  0x23   :  { %515 = vmatprep.subr.bf16.mxu1 %v641_v0  ;;  %540 = vmatpush3.bf16.msra.mxu0 %v585_v13  ;;  %v453_v49 = vld [vmem:[%s776_s4] ss:$0 sm:$0xff] }
  0x24   :  { %541 = vmatprep.subr.bf16.mxu0 %v641_v0 }
  0x26   :  { %516 = vmatpush3.bf16.msra.mxu1 %v579_v6 }
  0x27   :  { %517 = vmatprep.subr.bf16.mxu1 %v641_v0  ;;  %542 = vmatpush3.bf16.msra.mxu0 %v586_v14  ;;  %v462_v14 = vld [vmem:[%s778_s6] ss:$0 sm:$0xff] }
  0x28   :  { %543 = vmatprep.subr.bf16.mxu0 %v641_v0 }
  0x29   :  { %504 = vmatmul.mubr.msk.bf16.gmra.mxu0 %vm91_vm1, %v575_v5 }
  0x2a   :  { %507 = vmatprep.mubr.msk.bf16.mxu0 %vm642_vm0, %v641_v0  ;;  %518 = vmatpush3.bf16.msra.mxu1 %v580_v7 }
  0x2b   :  { %519 = vmatprep.subr.bf16.mxu1 %v641_v0  ;;  %544 = vmatpush3.bf16.msra.mxu0 %v587_v15 }
  0x2c   :  { %545 = vmatprep.subr.bf16.mxu0 %v641_v0 }
  0x2e   :  { %520 = vmatpush3.bf16.msra.mxu1 %v581_v9 }
  0x2f   :  { %521 = vmatprep.subr.bf16.mxu1 %v641_v0  ;;  %546 = vmatpush3.bf16.msra.mxu0 %v588_v16 }
  0x30   :  { %547 = vmatprep.subr.bf16.mxu0 %v641_v0 }
  0x31   :  { %508 = vmatmul.mubr.msk.bf16.gmra.mxu0 %vm91_vm1, %v576_v8 }
  0x32   :  { %555 = vmatprep.mubr.msk.bf16.mxu0 %vm642_vm0, %v641_v0  ;;  %522 = vmatpush3.bf16.msra.mxu1 %v582_v10 }
  0x33   :  { %523 = vmatprep.subr.bf16.mxu1 %v641_v0  ;;  %548 = vmatpush3.bf16.msra.mxu0 %v589_v17 }
  0x34   :  { %549 = vmatprep.subr.bf16.mxu0 %v641_v0 }
  0x36   :  { %524 = vmatpush3.bf16.msra.mxu1 %v583_v11 }
  0x37   :  { %525 = vmatprep.subr.bf16.mxu1 %v641_v0  ;;  %550 = vmatpush3.bf16.msra.mxu0 %v590_v46 }
  0x38   :  { %551 = vmatprep.subr.bf16.mxu0 %v641_v0 }
  0x3a   :  { %526 = vmatpush3.bf16.msra.mxu1 %v584_v12 }
  0x3b   :  { %552 = vmatpush3.bf16.msra.mxu0 %v591_v47 }
  0x3c   :  { %553 = vmatprep.subr.bf16.mxu0 %v641_v0 }
  0x3f   :  { %554 = vmatpush3.bf16.msra.mxu0 %v592_v48 }
  0xe1   :  { %v135_v19 = vpop.f32.mrf.mxu0 }
  0xe2   :  { %v136_v21 = vadd.f32 %v445_v18, %v135_v19 }
  0xe3   :  { %v501_v20 = vpop.f32.mrf.mxu0 }
  0xe4   :  { %v158_v25 = vmax.f32 %v136_v21, 0.0 }
  0xe5   :  { %v138_v22 = vpop.f32.mrf.mxu0 }
  0xe6   :  { %v139_v23 = vadd.f32 %v445_v18, %v138_v22 }
  0xe7   :  { %v502_v24 = vpop.f32.mrf.mxu0 }
  0xe8   :  { %v159_v26 = vmax.f32 %v139_v23, 0.0 }
  0xe9   :  { %v143_v27 = vpop.f32.mrf.mxu0 }
  0xea   :  { %v164_v28 = vpack.c.bf16 %v159_v26, %v158_v25  ;;  %v144_v30 = vadd.f32 %v445_v18, %v143_v27 }
  0xeb   :  { %v505_v29 = vpop.f32.mrf.mxu0 }
  0xec   :  { %528 = vmatmul.mubr.bf16.vlgmr.msra.gmra.mxu1 %v164_v28  ;;  %v160_v34 = vmax.f32 %v144_v30, 0.0 }
  0xed   :  { %v146_v31 = vpop.f32.mrf.mxu0  ;;  %531 = vmatprep.mubr.msk.bf16.mxu1 %vm642_vm0, %v641_v0 }
  0xee   :  { %v147_v32 = vadd.f32 %v445_v18, %v146_v31 }
  0xef   :  { %v506_v33 = vpop.f32.mrf.mxu0 }
  0xf0   :  { %v161_v35 = vmax.f32 %v147_v32, 0.0 }
  0xf1   :  { %v151_v36 = vpop.f32.mrf.mxu0 }
  0xf2   :  { %v165_v37 = vpack.c.bf16 %v161_v35, %v160_v34  ;;  %v152_v39 = vadd.f32 %v445_v18, %v151_v36 }
  0xf3   :  { %v509_v38 = vpop.f32.mrf.mxu0 }
  0xf4   :  { %532 = vmatmul.mubr.bf16.gmra.mxu1 %v165_v37  ;;  %v162_v43 = vmax.f32 %v152_v39, 0.0 }
  0xf5   :  { %v154_v40 = vpop.f32.mrf.mxu0  ;;  %535 = vmatprep.mubr.msk.bf16.mxu1 %vm642_vm0, %v641_v0 }
  0xf6   :  { %v155_v41 = vadd.f32 %v445_v18, %v154_v40 }
  0xf7   :  { %v510_v42 = vpop.f32.mrf.mxu0 }
  0xf8   :  { %v163_v44 = vmax.f32 %v155_v41, 0.0 }
  0xfa   :  { %v166_v45 = vpack.c.bf16 %v163_v44, %v162_v43 }
  0xfc   :  { %536 = vmatmul.mubr.bf16.gmra.mxu1 %v166_v45 }
 0x1ac   :  { %v272_v50 = vpop.f32.mrf.mxu1 }
 0x1ad   :  { %v273_v52 = vadd.f32 %v453_v49, %v272_v50 }
 0x1ae   :  { %v529_v51 = vpop.f32.mrf.mxu1 }
 0x1af   :  { %v295_v56 = vmax.f32 %v273_v52, 0.0 }
 0x1b0   :  { %v275_v53 = vpop.f32.mrf.mxu1 }
 0x1b1   :  { %v276_v54 = vadd.f32 %v453_v49, %v275_v53 }
 0x1b2   :  { %v530_v55 = vpop.f32.mrf.mxu1 }
 0x1b3   :  { %v296_v57 = vmax.f32 %v276_v54, 0.0 }
 0x1b4   :  { %v280_v58 = vpop.f32.mrf.mxu1 }
 0x1b5   :  { %v301_v59 = vpack.c.bf16 %v296_v57, %v295_v56  ;;  %v281_v61 = vadd.f32 %v453_v49, %v280_v58 }
 0x1b6   :  { %v533_v60 = vpop.f32.mrf.mxu1 }
 0x1b7   :  { %556 = vmatmul.mubr.bf16.vlgmr.msra.gmra.mxu0 %v301_v59  ;;  %v297_v2 = vmax.f32 %v281_v61, 0.0 }
 0x1b8   :  { %v283_v62 = vpop.f32.mrf.mxu1  ;;  %559 = vmatprep.mubr.msk.bf16.mxu0 %vm642_vm0, %v641_v0 }
 0x1b9   :  { %v284_v63 = vadd.f32 %v453_v49, %v283_v62 }
 0x1ba   :  { %v534_v1 = vpop.f32.mrf.mxu1 }
 0x1bb   :  { %v298_v3 = vmax.f32 %v284_v63, 0.0 }
 0x1bc   :  { %v288_v4 = vpop.f32.mrf.mxu1 }
 0x1bd   :  { %v302_v5 = vpack.c.bf16 %v298_v3, %v297_v2  ;;  %v289_v7 = vadd.f32 %v453_v49, %v288_v4 }
 0x1be   :  { %v537_v6 = vpop.f32.mrf.mxu1 }
 0x1bf   :  { %560 = vmatmul.mubr.bf16.gmra.mxu0 %v302_v5  ;;  %v299_v11 = vmax.f32 %v289_v7, 0.0 }
 0x1c0   :  { %v291_v8 = vpop.f32.mrf.mxu1  ;;  %563 = vmatprep.mubr.msk.bf16.mxu0 %vm642_vm0, %v641_v0 }
 0x1c1   :  { %v292_v9 = vadd.f32 %v453_v49, %v291_v8 }
 0x1c2   :  { %v538_v10 = vpop.f32.mrf.mxu1 }
 0x1c3   :  { %v300_v12 = vmax.f32 %v292_v9, 0.0 }
 0x1c5   :  { %v303_v13 = vpack.c.bf16 %v300_v12, %v299_v11 }
 0x1c7   :  { %564 = vmatmul.mubr.bf16.gmra.mxu0 %v303_v13 }
 0x277   :  { %v409_v15 = vpop.f32.mrf.mxu0 }
 0x278   :  { %v410_v16 = vadd.f32 %v462_v14, %v409_v15 }
 0x279   :  { %v557_v17 = vpop.f32.mrf.mxu0 }
 0x27a   :  { %433 = vst.msk [vmem:[%s779_s7] sm:$0xff] %vm432_vm2, %v410_v16 }
 0x27b   :  { %v412_v0 = vpop.f32.mrf.mxu0 }
 0x27c   :  { %v413_v18 = vadd.f32 %v462_v14, %v412_v0 }
 0x27d   :  { %v558_v19 = vpop.f32.mrf.mxu0 }
 0x27e   :  { %434 = vst.msk [vmem:[%s779_s7 + $0x8] sm:$0xff] %vm432_vm2, %v413_v18 }
 0x27f   :  { %v417_v20 = vpop.f32.mrf.mxu0 }
 0x280   :  { %v418_v21 = vadd.f32 %v462_v14, %v417_v20 }
 0x281   :  { %v561_v22 = vpop.f32.mrf.mxu0 }
 0x282   :  { %435 = vst.msk [vmem:[%s779_s7 + $0x10] sm:$0xff] %vm432_vm2, %v418_v21 }
 0x283   :  { %v420_v23 = vpop.f32.mrf.mxu0 }
 0x284   :  { %v421_v24 = vadd.f32 %v462_v14, %v420_v23 }
 0x285   :  { %v562_v25 = vpop.f32.mrf.mxu0 }
 0x286   :  { %436 = vst.msk [vmem:[%s779_s7 + $0x18] sm:$0xff] %vm432_vm2, %v421_v24 }
 0x287   :  { %v425_v26 = vpop.f32.mrf.mxu0 }
 0x288   :  { %v426_v27 = vadd.f32 %v462_v14, %v425_v26 }
 0x289   :  { %v565_v28 = vpop.f32.mrf.mxu0 }
 0x28a   :  { %437 = vst.msk [vmem:[%s779_s7 + $0x20] sm:$0xff] %vm432_vm2, %v426_v27 }
 0x28b   :  { %v428_v29 = vpop.f32.mrf.mxu0 }
 0x28c   :  { %v429_v30 = vadd.f32 %v462_v14, %v428_v29 }
 0x28d   :  { %v566_v31 = vpop.f32.mrf.mxu0 }
 0x28e   :  { %438 = vst.msk [vmem:[%s779_s7 + $0x28] sm:$0xff] %vm432_vm2, %v429_v30 }
 0x28f   :  { %443 = vsyncpa [#allocation3], 1 }
 0x290   :  { %444 = vsyncpa [#allocation5], 1 }

</bundles_post_ra>
